<compile_context>
chip_gen: v5e
topology: v5e:2x2
jax: 0.10.0
libtpu: 0.0.40
codegen_flags: <defaults>
</compile_context>

<pallas_src>
import functools
import math

import jax
import jax.numpy as jnp
from jax.experimental import pallas as pl
from jax.experimental.pallas import tpu as pltpu


_LANE = 128
_MIN_TILE_BYTES = 1 << 20          # tiles >= ~1 MiB sit on the HBM roofline plateau
_FALLBACK_VMEM_CAP = 64 * 1024 * 1024


def _round_up(a, b):
    return (a + b - 1) // b * b


def _vmem_capacity_bytes():
    try:
        return int(pltpu.get_tpu_info().vmem_capacity_bytes)
    except Exception:
        return _FALLBACK_VMEM_CAP   # conservative: fits v5e/v6e/v7x


def _pick_row_tile(bc, bytes_per_row, budget, min_rows):
    """Row tile: largest multiple of min_rows fitting the VMEM budget, shrunk to
    give >=4 (if tiles stay >= _MIN_TILE_BYTES) or >=2 grid steps (megacore /
    pipeline overlap).  Grid uses cdiv, so tr does not have to divide bc."""
    if bc <= min_rows:
        return bc                                    # single full-extent block
    max_tr = max(min_rows, (budget // max(bytes_per_row, 1)) // min_rows * min_rows)
    max_tr = min(max_tr, _round_up(bc, min_rows))
    for target_steps in (4, 2):
        cand = min(_round_up(pl.cdiv(bc, target_steps), min_rows), max_tr)
        if pl.cdiv(bc, cand) >= target_steps and (
                target_steps == 2 or cand * bytes_per_row >= _MIN_TILE_BYTES):
            return cand
    return max_tr


# ---------------------------------------------------------------------------
# Path A: single pass, full spatial extent per row tile.
# ---------------------------------------------------------------------------
def _adain_fused_kernel(x_ref, w_ref, b_ref, o_ref, *, eps, inv_n, tr, n_blocks):
    x = x_ref[...].astype(jnp.float32)                     # (tr, S) logical block
    # S is the full array extent, so lane sums are exact (no pad correction).
    mean = jnp.sum(x, axis=-1, keepdims=True) * inv_n
    centered = x - mean
    var = jnp.sum(centered * centered, axis=-1, keepdims=True) * inv_n
    inv_std = jax.lax.rsqrt(var + eps)

    if n_blocks == 1:
        w = w_ref[...]
        b = b_ref[...]
    else:
        off = pl.multiple_of(pl.program_id(0) * tr, tr)    # resident params
        w = w_ref[pl.ds(off, tr), :]
        b = b_ref[pl.ds(off, tr), :]
    o_ref[...] = (centered * (inv_std * w.astype(jnp.float32))
                  + b.astype(jnp.float32)).astype(o_ref.dtype)


# ---------------------------------------------------------------------------
# Path B: spatially tiled, two-phase (stats pass + apply pass).
# ---------------------------------------------------------------------------
def _adain_stats_kernel(x_ref, mean_ref, inv_ref, shift_s, sum_s, sq_s,
                        *, eps, s_true, ts, n0, ragged):
    j = pl.program_id(1)
    x = x_ref[...].astype(jnp.float32)                     # (tr, ts)
    if ragged:
        lane = jax.lax.broadcasted_iota(jnp.int32, x.shape, 1) + j * ts
        valid = lane < s_true
        x = jnp.where(valid, x, 0.0)

    @pl.when(j == 0)
    def _():
        # Shift by the first chunk's mean so E[d^2] - E[d]^2 does not suffer
        # catastrophic cancellation when |mean| >> std.
        shift_s[...] = jnp.sum(x, axis=-1, keepdims=True) * (1.0 / n0)
        sum_s[...] = jnp.zeros_like(sum_s)
        sq_s[...] = jnp.zeros_like(sq_s)

    d = x - shift_s[...]
    if ragged:
        d = jnp.where(valid, d, 0.0)
    sum_s[...] += jnp.sum(d, axis=-1, keepdims=True)
    sq_s[...] += jnp.sum(d * d, axis=-1, keepdims=True)

    @pl.when(j == pl.num_programs(1) - 1)
    def _():
        inv_n = jnp.float32(1.0 / s_true)
        dmean = sum_s[...] * inv_n
        var = jnp.maximum(sq_s[...] * inv_n - dmean * dmean, 0.0)
        mean_ref[...] = shift_s[...] + dmean
        inv_ref[...] = jax.lax.rsqrt(var + eps)


def _adain_apply_kernel(x_ref, mean_ref, inv_ref, w_ref, b_ref, o_ref, *, tr, n_r):
    if n_r == 1:
        mean = mean_ref[...]
        inv = inv_ref[...]
        w = w_ref[...]
        b = b_ref[...]
    else:
        off = pl.multiple_of(pl.program_id(0) * tr, tr)
        mean = mean_ref[pl.ds(off, tr), :]
        inv = inv_ref[pl.ds(off, tr), :]
        w = w_ref[pl.ds(off, tr), :]
        b = b_ref[pl.ds(off, tr), :]
    x = x_ref[...].astype(jnp.float32)
    o_ref[...] = ((x - mean) * (inv * w.astype(jnp.float32))
                  + b.astype(jnp.float32)).astype(o_ref.dtype)


# ---------------------------------------------------------------------------
# Wrapper
# ---------------------------------------------------------------------------
def adaptive_instance_norm(x, weight, bias, *, eps=1e-5, vmem_budget_bytes=None):
    """AdaIN forward: x (B, C, *spatial), weight/bias (B*C,)."""
    orig_shape = x.shape
    B, C = orig_shape[0], orig_shape[1]
    S = math.prod(orig_shape[2:])
    BC = B * C
    dtype = x.dtype
    itemsize = jnp.dtype(dtype).itemsize
    min_rows = max(8, 32 // itemsize)           # sublane packing: 8 f32 / 16 bf16

    vmem_cap = _vmem_capacity_bytes()
    vmem_limit = int(min(vmem_cap * 3 // 4, vmem_cap - (8 << 20)))
    budget = (vmem_cap // 2) if vmem_budget_bytes is None else int(vmem_budget_bytes)

    x2d = x.reshape(BC, S)                      # contiguous reshape: free in XLA
    w2d = weight.reshape(BC, 1)
    b2d = bias.reshape(BC, 1)

    S_lanes = _round_up(S, _LANE)               # physical lanes per row in VMEM
    # 4 pipeline buffers (2x in + 2x out, native dtype) + ~3 full-tile f32 temps.
    bytes_per_row = S_lanes * (4 * itemsize + 3 * 4)

    if min(BC, min_rows) * bytes_per_row <= budget:
        # ---- Path A: one pass, full spatial extent per row tile. ----
        tr = _pick_row_tile(BC, bytes_per_row, budget, min_rows)
        n_blocks = pl.cdiv(BC, tr)
        bc_pad = n_blocks * tr                  # pad ONLY the tiny param vectors so
        if bc_pad != BC:                        # in-kernel pl.ds never reads OOB
            w2d = jnp.pad(w2d, ((0, bc_pad - BC), (0, 0)))
            b2d = jnp.pad(b2d, ((0, bc_pad - BC), (0, 0)))

        out2d = pl.pallas_call(
            functools.partial(_adain_fused_kernel, eps=eps, inv_n=1.0 / S,
                              tr=tr, n_blocks=n_blocks),
            out_shape=jax.ShapeDtypeStruct((BC, S), dtype),
            grid_spec=pltpu.PrefetchScalarGridSpec(
                num_scalar_prefetch=0,
                grid=(n_blocks,),
                in_specs=[
                    pl.BlockSpec((tr, S), lambda i: (i, 0)),       # streamed
                    pl.BlockSpec((bc_pad, 1), lambda i: (0, 0)),   # resident, 1 DMA
                    pl.BlockSpec((bc_pad, 1), lambda i: (0, 0)),   # resident, 1 DMA
                ],
                out_specs=pl.BlockSpec((tr, S), lambda i: (i, 0)),
            ),
            compiler_params=pltpu.CompilerParams(
                dimension_semantics=("parallel",),
                vmem_limit_bytes=vmem_limit),
        )(x2d, w2d, b2d)
    else:
        # ---- Path B: spatial tiling + two-phase reduction. ----
        tr = min(min_rows, BC)
        bytes_per_elem = 4 * itemsize + 2 * 4   # pipeline buffers + ~2 f32 temps
        ts = (budget // max(tr * bytes_per_elem, 1)) // _LANE * _LANE
        ts = max(_LANE, ts)
        if ts >= S:
            ts = S                              # full-extent spatial block
        ragged = (S % ts) != 0
        n0 = min(ts, S)                         # valid lanes in the first chunk
        n_r = pl.cdiv(BC, tr)
        n_s = pl.cdiv(S, ts)
        bc_pad = n_r * tr
        if bc_pad != BC:
            w2d = jnp.pad(w2d, ((0, bc_pad - BC), (0, 0)))
            b2d = jnp.pad(b2d, ((0, bc_pad - BC), (0, 0)))

        mean2d, inv2d = pl.pallas_call(
            functools.partial(_adain_stats_kernel, eps=eps, s_true=S, ts=ts,
                              n0=n0, ragged=ragged),
            out_shape=(jax.ShapeDtypeStruct((bc_pad, 1), jnp.float32),
                       jax.ShapeDtypeStruct((bc_pad, 1), jnp.float32)),
            grid_spec=pltpu.PrefetchScalarGridSpec(
                num_scalar_prefetch=0,
                grid=(n_r, n_s),
                in_specs=[pl.BlockSpec((tr, ts), lambda i, j: (i, j))],
                out_specs=[pl.BlockSpec((tr, 1), lambda i, j: (i, 0)),
                           pl.BlockSpec((tr, 1), lambda i, j: (i, 0))],
                scratch_shapes=[pltpu.VMEM((tr, 1), jnp.float32)] * 3,
            ),
            compiler_params=pltpu.CompilerParams(
                dimension_semantics=("parallel", "arbitrary"),
                vmem_limit_bytes=vmem_limit),
        )(x2d)

        out2d = pl.pallas_call(
            functools.partial(_adain_apply_kernel, tr=tr, n_r=n_r),
            out_shape=jax.ShapeDtypeStruct((BC, S), dtype),
            grid_spec=pltpu.PrefetchScalarGridSpec(
                num_scalar_prefetch=0,
                grid=(n_r, n_s),
                in_specs=[
                    pl.BlockSpec((tr, ts), lambda i, j: (i, j)),
                    pl.BlockSpec((bc_pad, 1), lambda i, j: (0, 0)),
                    pl.BlockSpec((bc_pad, 1), lambda i, j: (0, 0)),
                    pl.BlockSpec((bc_pad, 1), lambda i, j: (0, 0)),
                    pl.BlockSpec((bc_pad, 1), lambda i, j: (0, 0)),
                ],
                out_specs=pl.BlockSpec((tr, ts), lambda i, j: (i, j)),
            ),
            compiler_params=pltpu.CompilerParams(
                dimension_semantics=("parallel", "parallel"),
                vmem_limit_bytes=vmem_limit),
        )(x2d, mean2d, inv2d, w2d, b2d)

    return out2d.reshape(orig_shape)


def _reference_adain(x, weight, bias, eps=1e-5):
    """Pure-JAX reference mirroring F.batch_norm(training=True) on (1, B*C, ...)."""
    B, C = x.shape[0], x.shape[1]
    xr = x.reshape(B * C, -1).astype(jnp.float32)
    mean = xr.mean(axis=-1, keepdims=True)
    var = ((xr - mean) ** 2).mean(axis=-1, keepdims=True)   # biased variance
    xhat = (xr - mean) / jnp.sqrt(var + eps)
    out = xhat * weight.reshape(-1, 1).astype(jnp.float32) \
        + bias.reshape(-1, 1).astype(jnp.float32)
    return out.reshape(x.shape).astype(x.dtype)


if __name__ == "__main__":
    key = jax.random.PRNGKey(0)
    keys = jax.random.split(key, 12)

    # --- Test 1: module-sized input (B=2, C=4, 16x16) -> fused single-pass path.
    B, C, H, W = 2, 4, 16, 16
    x = jax.random.normal(keys[0], (B, C, H, W), dtype=jnp.float32)
    w = 1.0 + 0.1 * jax.random.normal(keys[1], (B * C,), dtype=jnp.float32)
    b = 0.1 * jax.random.normal(keys[2], (B * C,), dtype=jnp.float32)
    out = jax.block_until_ready(adaptive_instance_norm(x, w, b, eps=1e-5))
    ref = _reference_adain(x, w, b, eps=1e-5)
    assert out.shape == (B, C, H, W)
    assert jnp.allclose(out, ref, atol=1e-4, rtol=1e-4), "fused path mismatch"

    # --- Test 2: ragged shapes (BC=6 rows, 15x15 spatial) -> full-extent blocks,
    #             no host-side padding or output slicing.
    x = 2.0 + jax.random.normal(keys[3], (2, 3, 15, 15), dtype=jnp.float32)
    w = 1.0 + 0.1 * jax.random.normal(keys[4], (6,), dtype=jnp.float32)
    b = 0.1 * jax.random.normal(keys[5], (6,), dtype=jnp.float32)
    out = jax.block_until_ready(adaptive_instance_norm(x, w, b, eps=1e-5))
    ref = _reference_adain(x, w, b, eps=1e-5)
    assert out.shape == (2, 3, 15, 15)
    assert jnp.allclose(out, ref, atol=1e-4, rtol=1e-4), "ragged fused mismatch"

    # --- Test 3: force the spatially-tiled two-phase path via a tiny VMEM budget.
    x = jax.random.normal(keys[6], (2, 4, 32, 32), dtype=jnp.float32)
    w = 1.0 + 0.1 * jax.random.normal(keys[7], (8,), dtype=jnp.float32)
    b = 0.1 * jax.random.normal(keys[8], (8,), dtype=jnp.float32)
    out = jax.block_until_ready(
        adaptive_instance_norm(x, w, b, eps=1e-5, vmem_budget_bytes=64 * 1024))
    ref = _reference_adain(x, w, b, eps=1e-5)
    assert out.shape == (2, 4, 32, 32)
    assert jnp.allclose(out, ref, atol=1e-3, rtol=1e-3), "tiled path mismatch"

    # --- Test 4: two-phase path with ragged rows AND ragged spatial tail.
    x = 3.0 + jax.random.normal(keys[9], (3, 5, 17, 17), dtype=jnp.float32)
    w = 1.0 + 0.1 * jax.random.normal(keys[10], (15,), dtype=jnp.float32)
    b = 0.1 * jax.random.normal(keys[11], (15,), dtype=jnp.float32)
    out = jax.block_until_ready(
        adaptive_instance_norm(x, w, b, eps=1e-5, vmem_budget_bytes=64 * 1024))
    ref = _reference_adain(x, w, b, eps=1e-5)
    assert out.shape == (3, 5, 17, 17)
    assert jnp.allclose(out, ref, atol=1e-3, rtol=1e-3), "ragged tiled mismatch"

    print("KERNEL_OK")
</pallas_src>

<mosaic_0001>
module attributes {stable_mosaic.version = 11 : i64} {
  func.func @_adain_fused_kernel(%arg0: i32, %arg1: memref<8x256xf32, #tpu.memory_space<vmem>>, %arg2: memref<8x1xf32, #tpu.memory_space<vmem>>, %arg3: memref<8x1xf32, #tpu.memory_space<vmem>>, %arg4: memref<8x256xf32, #tpu.memory_space<vmem>>) attributes {dimension_semantics = [#tpu.dimension_semantics<parallel>], iteration_bounds = array<i64: 1>, scalar_prefetch = 0 : i64, scratch_operands = 0 : i64, tpu.core_type = #tpu.core_type<tc>, window_params = [{transform_indices = @transform_0, window_bounds = array<i64: 8, 256>}, {pipeline_mode = #tpu.pipeline_mode<synchronous>, transform_indices = @transform_1, window_bounds = array<i64: 8, 1>}, {pipeline_mode = #tpu.pipeline_mode<synchronous>, transform_indices = @transform_2, window_bounds = array<i64: 8, 1>}, {transform_indices = @transform_3, window_bounds = array<i64: 8, 256>}]} {
    %c0 = arith.constant 0 : index
    %c0_0 = arith.constant 0 : index
    %0 = vector.load %arg1[%c0, %c0_0] : memref<8x256xf32, #tpu.memory_space<vmem>>, vector<8x256xf32>
    %cst = arith.constant dense<0.000000e+00> : vector<8xf32>
    %1 = vector.multi_reduction <add>, %0, %cst [1] : vector<8x256xf32> to vector<8xf32>
    %2 = vector.shape_cast %1 : vector<8xf32> to vector<8x1xf32>
    %cst_1 = arith.constant 3.906250e-03 : f32
    %3 = vector.broadcast %cst_1 : f32 to vector<8x1xf32>
    %4 = arith.mulf %2, %3 : vector<8x1xf32>
    %5 = vector.broadcast %4 : vector<8x1xf32> to vector<8x256xf32>
    %6 = arith.subf %0, %5 : vector<8x256xf32>
    %7 = arith.mulf %6, %6 : vector<8x256xf32>
    %cst_2 = arith.constant dense<0.000000e+00> : vector<8xf32>
    %8 = vector.multi_reduction <add>, %7, %cst_2 [1] : vector<8x256xf32> to vector<8xf32>
    %9 = vector.shape_cast %8 : vector<8xf32> to vector<8x1xf32>
    %cst_3 = arith.constant 3.906250e-03 : f32
    %10 = vector.broadcast %cst_3 : f32 to vector<8x1xf32>
    %11 = arith.mulf %9, %10 : vector<8x1xf32>
    %cst_4 = arith.constant 9.99999974E-6 : f32
    %12 = vector.broadcast %cst_4 : f32 to vector<8x1xf32>
    %13 = arith.addf %11, %12 : vector<8x1xf32>
    %14 = math.rsqrt %13 : vector<8x1xf32>
    %c0_5 = arith.constant 0 : index
    %c0_6 = arith.constant 0 : index
    %15 = vector.load %arg2[%c0_5, %c0_6] : memref<8x1xf32, #tpu.memory_space<vmem>>, vector<8x1xf32>
    %c0_7 = arith.constant 0 : index
    %c0_8 = arith.constant 0 : index
    %16 = vector.load %arg3[%c0_7, %c0_8] : memref<8x1xf32, #tpu.memory_space<vmem>>, vector<8x1xf32>
    %17 = arith.mulf %14, %15 : vector<8x1xf32>
    %18 = vector.broadcast %17 : vector<8x1xf32> to vector<8x256xf32>
    %19 = arith.mulf %6, %18 : vector<8x256xf32>
    %20 = vector.broadcast %16 : vector<8x1xf32> to vector<8x256xf32>
    %21 = arith.addf %19, %20 : vector<8x256xf32>
    %c0_9 = arith.constant 0 : index
    %c0_10 = arith.constant 0 : index
    %22 = vector.load %arg4[%c0_9, %c0_10] : memref<8x256xf32, #tpu.memory_space<vmem>>, vector<8x256xf32>
    tpu.vector_store %arg4[%c0_9, %c0_10], %21 {strides = array<i32>} : memref<8x256xf32, #tpu.memory_space<vmem>>, vector<8x256xf32>,
    return
  }
  func.func @transform_0(%arg0: i32) -> (i32, i32) {
    %c0_i32 = arith.constant 0 : i32
    %c0_i32_0 = arith.constant 0 : i32
    return %arg0, %c0_i32 : i32, i32
  }
  func.func @transform_1(%arg0: i32) -> (i32, i32) {
    %c0_i32 = arith.constant 0 : i32
    %c0_i32_0 = arith.constant 0 : i32
    %c0_i32_1 = arith.constant 0 : i32
    return %c0_i32, %c0_i32_0 : i32, i32
  }
  func.func @transform_2(%arg0: i32) -> (i32, i32) {
    %c0_i32 = arith.constant 0 : i32
    %c0_i32_0 = arith.constant 0 : i32
    %c0_i32_1 = arith.constant 0 : i32
    return %c0_i32, %c0_i32_0 : i32, i32
  }
  func.func @transform_3(%arg0: i32) -> (i32, i32) {
    %c0_i32 = arith.constant 0 : i32
    %c0_i32_0 = arith.constant 0 : i32
    return %arg0, %c0_i32 : i32, i32
  }
}

</mosaic_0001>

<bundles_post_ra>
// kernel: tpu_custom_call.1
= control target key start
LH: loop header
LB: loop body
LE: loop exit
PB: predicated region body
PF: predicated region fallthrough
CT: control target
= control target key end

     0   :  { %s144_s0 = inlined_call_operand.vmem [shape: f32[8,256], index: 0, kind: input, shape index: {}]   ;;  %s145_s1 = inlined_call_operand.vmem [shape: f32[8,1], index: 1, kind: input, shape index: {}]   ;;  %s146_s2 = inlined_call_operand.vmem [shape: f32[8,1], index: 2, kind: input, shape index: {}]   ;;  %s147_s3 = inlined_call_operand.hbm [shape: f32[8,256], index: 3, kind: output, shape index: {}]  }
   0x1   :  { %v15_v0 = vld [vmem:[%s144_s0] sm:$0xff]  ;;  %v16_v1 = vld [vmem:[%s144_s0 + $0x8] sm:$0xff] }
   0x2   :  { %8 = vsyncpa [#allocation3], 0  ;;  %v17_v2 = vadd.f32 %v16_v1, %v15_v0  ;;  %v107_v10 = vmov 0   ;;  %v40_v20 = vld [vmem:[%s145_s1] sm:$0xff]  ;;  %s108_s19 = smov [#allocation2]   ;;  %s66_s23 = sshll.u32 %s147_s3, 4  ;;  %s67_s23 = int_to_ptr.hbm [resolvable:$true] %s66_s23 }
   0x3   :  { %77 = vset.pattern.permute.xlu1 %v107_v10  ;;  %78 = vset.pattern.permute.xlu0 %v107_v10  ;;  %v41_v23 = vld [vmem:[%s146_s2] sm:$0xff]  ;;  %s64_s20 = sshll.u32 %s108_s19, 4  ;;  %s65_s20 = int_to_ptr.vmem [resolvable:$true] %s64_s20 }
   0x4   :  { %18 = vadd.xlane.f32.xlu0 %v17_v2 }
  0x77   :  { %v19_v3 = vpop.xlane.xlu0 %18 }
  0x78   :  { %v20_v4 = vmul.f32 0.00390625, %v19_v3 }
  0x7a   :  { %v21_v5 = vsub.f32 %v15_v0, %v20_v4  ;;  %v22_v6 = vsub.f32 %v16_v1, %v20_v4 }
  0x7c   :  { %v23_v7 = vmul.f32 %v21_v5, %v21_v5  ;;  %v24_v8 = vmul.f32 %v22_v6, %v22_v6 }
  0x7e   :  { %v25_v9 = vadd.f32 %v24_v8, %v23_v7 }
  0x80   :  { %26 = vadd.xlane.f32.xlu0 %v25_v9 }
  0xf3   :  { %v27_v11 = vpop.xlane.xlu0 %26 }
  0xf4   :  { %v28_v12 = vmul.f32 0.00390625, %v27_v11 }
  0xf6   :  { %v29_v13 = vadd.f32 1e-05, %v28_v12 }
  0xf8   :  { %79 = vrsqrt.f32 %v29_v13  ;;  %vm36_vm1 = vweird.f32 %v29_v13 }
  0xfe   :  { %v80_v14 = vpop.eup %79 }
  0xff   :  { %v31_v15 = vmul.f32 %v80_v14, %v29_v13  ;;  %vm37_vm0 = vweird.f32 %v80_v14 }
 0x100   :  { %vm38_vm2 = vmor %vm36_vm1, %vm37_vm0 }
 0x101   :  { %v32_v16 = vmul.f32 %v80_v14, %v31_v15 }
 0x103   :  { %v33_v17 = vmul.f32 0.5, %v32_v16 }
 0x105   :  { %v34_v18 = vsub.f32 1.5, %v33_v17 }
 0x107   :  { %v35_v19 = vmul.f32 %v80_v14, %v34_v18 }
 0x109   :  { %v39_v21 = vsel %vm38_vm2, %v80_v14, %v35_v19 }
 0x10a   :  { %v42_v22 = vmul.f32 %v40_v20, %v39_v21 }
 0x10c   :  { %45 = vperm.xlu1 %77, %v42_v22  }
 0x114   :  { %52 = vperm.xlu1 %77, %v41_v23  }
 0x17e   :  { %v46_v24 = vpop.permute.xlu1 %45 }
 0x17f   :  { %v48_v25 = vmul.f32 %v46_v24, %v21_v5  ;;  %v49_v26 = vmul.f32 %v46_v24, %v22_v6 }
 0x186   :  { %v53_v27 = vpop.permute.xlu1 %52 }
 0x187   :  { %v55_v28 = vadd.f32 %v53_v27, %v48_v25  ;;  %v56_v29 = vadd.f32 %v53_v27, %v49_v26 }
 0x189   :  { %57 = vst [vmem:[#allocation2] sm:$0xff] %v55_v28 }
 0x18a   :  { %58 = vst [vmem:[#allocation2 + $0x8] sm:$0xff] %v56_v29 }
 0x18b   :  { %69 = dma.vmem_to_hbm [thread:$0]  %s65_s20, 256, %s67_s23, [#allocation3]  }
 0x18c   :  { %105 = dma.done.wait [#allocation3], 256  }
 0x18d   :  { %106 = vsyncadd [#allocation3], 4294967040 }
 0x18e   :  { %74 = vsyncpa [#allocation3], 1 }

</bundles_post_ra>
